<compile_context>
chip_gen: v7x
topology: tpu7x:2x2x1
jax: 0.10.0
libtpu: 0.0.40
codegen_flags: <defaults>
</compile_context>

<pallas_src>
import math

import numpy as np

import jax
import jax.numpy as jnp
from jax import lax
from jax.experimental import pallas as pl
from jax.experimental import pallas as pl  # noqa: F811 (kept single import path)
from jax.experimental.pallas import tpu as pltpu  # noqa: F401  (imported per harness convention)

# ------------------------- model dimensions (small) -------------------------
B, T, H = 2, 8, 32          # batch, sequence, hidden (= context_vector_size)
BT = B * T                  # flattened rows fed to every matmul
NH, HD = 2, 16              # heads, head dim
FFN = 4 * H                 # 128
FC1 = 100
NCLS = 2
VOCAB = 64
EMB = VOCAB + T             # token rows + position rows in the embedding slab

# ---- packed-slab layout (all offsets static; sliced with zero runtime cost) ----
# W_col: column-stacked slab of all matrices with H rows, (H, 512) bf16,
#        each section starting on a 128-lane boundary.
WQKV_OFF = 0                # width 3H  (Q columns pre-scaled by 1/sqrt(HD))
WO_OFF = 128                # width H
W1_OFF = 256                # width FFN
FC1W_OFF = 384              # width FC1
WCOL_W = 512

# W_row: row-stacked slab of all matrices with H columns, (320, H) bf16,
#        each section starting on a 16-row boundary (bf16 sublane packing).
EMB_ROFF = 0                # rows EMB = 72   (tok_emb ; pos_emb)
W2_ROFF = 80                # rows FFN = 128
FC2W_ROFF = 208             # rows FC1 = 100  (fc2 weight zero-padded to H cols)
WROW_R = 320

# bias / LayerNorm slab, (1, 1280) f32, 128-lane aligned sections.
BQKV_OFF = 0                # 3H   (Q part pre-scaled by 1/sqrt(HD))
BO_OFF = 128                # H
B1_OFF = 256                # FFN
B2_OFF = 384                # H
LN1G_OFF = 512              # H
LN1B_OFF = 640              # H
LN2G_OFF = 768              # H
LN2B_OFF = 896              # H
FC1B_OFF = 1024             # FC1
FC2B_OFF = 1152             # NCLS
BIAS_W = 1280

# constant slab, (BT + B, BT) f32:
#   rows 0:BT    block-diagonal attention-bias base (0 / -1e9)
#   rows BT:BT+B mean-pool matrix (1/T on own-batch columns)


# --------------------------- in-kernel helpers ------------------------------
def _layernorm(x, g, b, eps=1e-12):
    mu = jnp.mean(x, axis=-1, keepdims=True)
    var = jnp.mean((x - mu) ** 2, axis=-1, keepdims=True)
    return (x - mu) * lax.rsqrt(var + eps) * g + b


def _bdot(a, b):
    # bf16 operands, f32 accumulation on the MXU (b is already bf16 in the slabs).
    return jnp.dot(a.astype(jnp.bfloat16), b, preferred_element_type=jnp.float32)


# ---------------------- fully fused forward kernel --------------------------
def fused_kernel(seq_ref, kmask_ref, wrow_ref, wcol_ref, bias_ref, const_ref,
                 out_ref):
    f32 = jnp.float32
    bf16 = jnp.bfloat16

    # ---- token + position embedding lookup as ONE one-hot bf16 matmul ----
    # one-hot has VOCAB token columns plus T position columns; the embedding
    # slab is tok_emb row-stacked with pos_emb, so x = tok_emb[id] + pos_emb[t].
    ids = seq_ref[...]                                             # (BT, 1) int32
    col = lax.broadcasted_iota(jnp.int32, (BT, EMB), 1)
    row = lax.broadcasted_iota(jnp.int32, (BT, EMB), 0)
    onehot = ((col == ids) | (col == VOCAB + (row & (T - 1)))).astype(bf16)
    x = jnp.dot(onehot, wrow_ref[EMB_ROFF:EMB_ROFF + EMB, :],
                preferred_element_type=f32)                        # (BT, H)

    # ---- attention bias: constant block-diagonal base + runtime key padding ----
    key_bias = (kmask_ref[...] - 1.0) * 1e9                        # (1, BT): 0 / -1e9
    attn_bias = const_ref[0:BT, :] + key_bias                      # (BT, BT)

    # ---- fused QKV projection (1/sqrt(HD) folded into Wq/bq at pack time) ----
    qkv = _bdot(x, wcol_ref[:, WQKV_OFF:WQKV_OFF + 3 * H]) \
        + bias_ref[:, BQKV_OFF:BQKV_OFF + 3 * H]                   # (BT, 3H)

    # ---- per-head attention; context folded straight into output projection ----
    attn = bias_ref[:, BO_OFF:BO_OFF + H]                          # start from bo
    for h in range(NH):                                            # static, NH=2
        qh = qkv[:, h * HD:(h + 1) * HD].astype(bf16)
        kh = qkv[:, H + h * HD:H + (h + 1) * HD].astype(bf16)
        vh = qkv[:, 2 * H + h * HD:2 * H + (h + 1) * HD].astype(bf16)
        s = lax.dot_general(qh, kh, (((1,), (1,)), ((), ())),
                            preferred_element_type=f32)            # (BT, BT)
        s = s + attn_bias
        s = s - jnp.max(s, axis=-1, keepdims=True)
        p = jnp.exp(s)
        p = p * pl.reciprocal(jnp.sum(p, axis=-1, keepdims=True), approx=True)
        ctx = jnp.dot(p.astype(bf16), vh, preferred_element_type=f32)  # (BT, HD)
        wo_h = wcol_ref[h * HD:(h + 1) * HD, WO_OFF:WO_OFF + H]        # (HD, H)
        attn = attn + _bdot(ctx, wo_h)                                 # (BT, H)

    h1 = _layernorm(x + attn,
                    bias_ref[:, LN1G_OFF:LN1G_OFF + H],
                    bias_ref[:, LN1B_OFF:LN1B_OFF + H])

    # ---- feed-forward ----
    ff = _bdot(h1, wcol_ref[:, W1_OFF:W1_OFF + FFN]) + bias_ref[:, B1_OFF:B1_OFF + FFN]
    ff = jax.nn.gelu(ff, approximate=True)   # TODO(synk): tanh approx (HF BERT uses erf gelu)
    ff = _bdot(ff, wrow_ref[W2_ROFF:W2_ROFF + FFN, :]) + bias_ref[:, B2_OFF:B2_OFF + H]
    h2 = _layernorm(h1 + ff,
                    bias_ref[:, LN2G_OFF:LN2G_OFF + H],
                    bias_ref[:, LN2B_OFF:LN2B_OFF + H])            # (BT, H)

    # ---- mean-pool over T (cont_reps[0].mean(1)) via constant pooling matmul ----
    pool = const_ref[BT:BT + B, :].astype(bf16)                    # (B, BT), exact in bf16
    pooled = jnp.dot(pool, h2.astype(bf16), preferred_element_type=f32)  # (B, H)

    # Dropout(0.2) == identity in eval mode.
    z = _bdot(pooled, wcol_ref[:, FC1W_OFF:FC1W_OFF + FC1]) \
        + bias_ref[:, FC1B_OFF:FC1B_OFF + FC1]                     # (B, FC1)
    z = jnp.maximum(z, 0.0)                                        # ReLU
    # Dropout(0.2) == identity in eval mode.
    logits = _bdot(z, wrow_ref[FC2W_ROFF:FC2W_ROFF + FC1, :])      # (B, H), cols >= NCLS are 0
    out_ref[...] = logits[:, :NCLS] + bias_ref[:, FC2B_OFF:FC2B_OFF + NCLS]


# ------------------------------ full forward --------------------------------
def bert_classifier_forward(seq, attn_masks, packed):
    w_row, w_col, bias_slab, const_slab = packed
    seq2d = seq.reshape(BT, 1).astype(jnp.int32)                   # (BT, 1)
    kmask = attn_masks.astype(jnp.float32).reshape(1, BT)          # (1, BT)

    # Everything fits trivially in VMEM; single launch, no grid, 6 input DMAs.
    return pl.pallas_call(
        fused_kernel,
        out_shape=jax.ShapeDtypeStruct((B, NCLS), jnp.float32),
    )(seq2d, kmask, w_row, w_col, bias_slab, const_slab)


# --------------------------- deterministic init ------------------------------
def init_params(key):
    ks = jax.random.split(key, 10)
    s = 0.02
    tok_emb = s * jax.random.normal(ks[0], (VOCAB, H), jnp.float32)
    pos_emb = s * jax.random.normal(ks[1], (T, H), jnp.float32)

    wqkv = s * jax.random.normal(ks[2], (H, 3 * H), jnp.float32)   # fused Q|K|V
    bqkv = jnp.zeros((1, 3 * H), jnp.float32)
    wo = s * jax.random.normal(ks[3], (H, H), jnp.float32)
    bo = jnp.zeros((1, H), jnp.float32)
    ln1g = jnp.ones((1, H), jnp.float32)
    ln1b = jnp.zeros((1, H), jnp.float32)
    w1 = s * jax.random.normal(ks[4], (H, FFN), jnp.float32)
    b1 = jnp.zeros((1, FFN), jnp.float32)
    w2 = s * jax.random.normal(ks[5], (FFN, H), jnp.float32)
    b2 = jnp.zeros((1, H), jnp.float32)
    ln2g = jnp.ones((1, H), jnp.float32)
    ln2b = jnp.zeros((1, H), jnp.float32)

    fc1_w = s * jax.random.normal(ks[6], (H, FC1), jnp.float32)
    fc1_b = jnp.zeros((1, FC1), jnp.float32)
    fc2_w = s * jax.random.normal(ks[7], (FC1, NCLS), jnp.float32)
    fc2_b = jnp.zeros((1, NCLS), jnp.float32)

    return (tok_emb, pos_emb, wqkv, bqkv, wo, bo, ln1g, ln1b,
            w1, b1, w2, b2, ln2g, ln2b, fc1_w, fc1_b, fc2_w, fc2_b)


def pack_params(raw):
    """One-time packing of the 18 raw tensors into 4 kernel inputs."""
    (tok_emb, pos_emb, wqkv, bqkv, wo, bo, ln1g, ln1b,
     w1, b1, w2, b2, ln2g, ln2b, fc1_w, fc1_b, fc2_w, fc2_b) = raw

    # Fold the 1/sqrt(HD) attention scale into the Q projection.
    scale = 1.0 / math.sqrt(HD)
    wqkv = jnp.concatenate([wqkv[:, :H] * scale, wqkv[:, H:]], axis=1)
    bqkv = jnp.concatenate([bqkv[:, :H] * scale, bqkv[:, H:]], axis=1)

    # Column-stacked bf16 slab of matrices with H rows (128-lane aligned sections).
    w_col = jnp.zeros((H, WCOL_W), jnp.float32)
    w_col = w_col.at[:, WQKV_OFF:WQKV_OFF + 3 * H].set(wqkv)
    w_col = w_col.at[:, WO_OFF:WO_OFF + H].set(wo)
    w_col = w_col.at[:, W1_OFF:W1_OFF + FFN].set(w1)
    w_col = w_col.at[:, FC1W_OFF:FC1W_OFF + FC1].set(fc1_w)
    w_col = w_col.astype(jnp.bfloat16)

    # Row-stacked bf16 slab of matrices with H columns (16-row aligned sections).
    w_row = jnp.zeros((WROW_R, H), jnp.float32)
    w_row = w_row.at[EMB_ROFF:EMB_ROFF + VOCAB, :].set(tok_emb)
    w_row = w_row.at[EMB_ROFF + VOCAB:EMB_ROFF + EMB, :].set(pos_emb)
    w_row = w_row.at[W2_ROFF:W2_ROFF + FFN, :].set(w2)
    w_row = w_row.at[FC2W_ROFF:FC2W_ROFF + FC1, :NCLS].set(fc2_w)  # zero-padded to H cols
    w_row = w_row.astype(jnp.bfloat16)

    # Bias / LayerNorm slab, f32 (elementwise math stays f32).
    bias = jnp.zeros((1, BIAS_W), jnp.float32)
    for off, vec in ((BQKV_OFF, bqkv), (BO_OFF, bo), (B1_OFF, b1), (B2_OFF, b2),
                     (LN1G_OFF, ln1g), (LN1B_OFF, ln1b), (LN2G_OFF, ln2g),
                     (LN2B_OFF, ln2b), (FC1B_OFF, fc1_b), (FC2B_OFF, fc2_b)):
        bias = bias.at[:, off:off + vec.shape[1]].set(vec)

    # Data-independent constants, hoisted to pack time and shipped as one slab:
    # block-diagonal attention-bias base and the (B, BT) mean-pool matrix.
    cb = np.arange(BT)[None, :] // T
    block_base = np.where((np.arange(BT)[:, None] // T) == cb, 0.0, -1e9)
    pool = (np.arange(B)[:, None] == cb).astype(np.float32) / T
    const = jnp.asarray(np.concatenate([block_base.astype(np.float32), pool],
                                       axis=0))                    # (BT + B, BT)

    return (w_row, w_col, bias, const)


if __name__ == "__main__":
    key = jax.random.PRNGKey(0)
    k_seq, k_params = jax.random.split(key)

    packed = pack_params(init_params(k_params))
    seq = jax.random.randint(k_seq, (B, T), 0, VOCAB, dtype=jnp.int32)
    attn_masks = jnp.array([[1] * T,
                            [1] * (T - 3) + [0] * 3], dtype=jnp.int32)  # pad last 3 of sample 1

    logits = bert_classifier_forward(seq, attn_masks, packed)
    jax.block_until_ready(logits)
    assert logits.shape == (B, NCLS) and logits.dtype == jnp.float32
    print("KERNEL_OK")
</pallas_src>

<mosaic_0001>
module attributes {stable_mosaic.version = 11 : i64} {
  func.func @fused_kernel(%arg0: memref<16x1xi32, #tpu.memory_space<vmem>>, %arg1: memref<1x16xf32, #tpu.memory_space<vmem>>, %arg2: memref<320x32xbf16, #tpu.memory_space<vmem>>, %arg3: memref<32x512xbf16, #tpu.memory_space<vmem>>, %arg4: memref<1x1280xf32, #tpu.memory_space<vmem>>, %arg5: memref<18x16xf32, #tpu.memory_space<vmem>>, %arg6: memref<2x2xf32, #tpu.memory_space<vmem>>) attributes {dimension_semantics = [], scalar_prefetch = 0 : i64, scratch_operands = 0 : i64, tpu.core_type = #tpu.core_type<tc>} {
    %c0 = arith.constant 0 : index
    %c0_0 = arith.constant 0 : index
    %0 = vector.load %arg0[%c0, %c0_0] : memref<16x1xi32, #tpu.memory_space<vmem>>, vector<16x1xi32>
    %1 = tpu.iota {dimensions = array<i32: 1>} : vector<16x72xi32>
    %2 = tpu.iota {dimensions = array<i32: 0>} : vector<16x72xi32>
    %3 = vector.broadcast %0 : vector<16x1xi32> to vector<16x72xi32>
    %4 = arith.cmpi eq, %1, %3 : vector<16x72xi32>
    %c7_i32 = arith.constant 7 : i32
    %5 = vector.broadcast %c7_i32 : i32 to vector<16x72xi32>
    %6 = arith.andi %2, %5 : vector<16x72xi32>
    %c64_i32 = arith.constant 64 : i32
    %7 = vector.broadcast %c64_i32 : i32 to vector<16x72xi32>
    %8 = arith.addi %7, %6 : vector<16x72xi32>
    %9 = arith.cmpi eq, %1, %8 : vector<16x72xi32>
    %10 = arith.ori %4, %9 : vector<16x72xi1>
    %11 = arith.extui %10 : vector<16x72xi1> to vector<16x72xi32>
    %12 = arith.sitofp %11 : vector<16x72xi32> to vector<16x72xf32>
    %13 = arith.truncf %12 : vector<16x72xf32> to vector<16x72xbf16>
    %c0_1 = arith.constant 0 : index
    %c0_2 = arith.constant 0 : index
    %14 = vector.load %arg2[%c0_1, %c0_2] : memref<320x32xbf16, #tpu.memory_space<vmem>>, vector<72x32xbf16>
    %cst = arith.constant dense<0.000000e+00> : vector<16x32xf32>
    %15 = tpu.matmul %13, %14, %cst {dimension_numbers = #tpu.dot_dimension_numbers<[1], [0], [0], [1], [0, 0, 1, 1], [], []>} : vector<16x72xbf16>, vector<72x32xbf16>, vector<16x32xf32> -> vector<16x32xf32>
    %c0_3 = arith.constant 0 : index
    %c0_4 = arith.constant 0 : index
    %16 = vector.load %arg1[%c0_3, %c0_4] : memref<1x16xf32, #tpu.memory_space<vmem>>, vector<1x16xf32>
    %cst_5 = arith.constant 1.000000e+00 : f32
    %17 = vector.broadcast %cst_5 : f32 to vector<1x16xf32>
    %18 = arith.subf %16, %17 : vector<1x16xf32>
    %cst_6 = arith.constant 1.000000e+09 : f32
    %19 = vector.broadcast %cst_6 : f32 to vector<1x16xf32>
    %20 = arith.mulf %18, %19 : vector<1x16xf32>
    %c0_7 = arith.constant 0 : index
    %c0_8 = arith.constant 0 : index
    %21 = vector.load %arg5[%c0_7, %c0_8] : memref<18x16xf32, #tpu.memory_space<vmem>>, vector<16x16xf32>
    %22 = vector.broadcast %20 : vector<1x16xf32> to vector<16x16xf32>
    %23 = arith.addf %21, %22 : vector<16x16xf32>
    %c0_9 = arith.constant 0 : index
    %c0_10 = arith.constant 0 : index
    %24 = vector.load %arg3[%c0_9, %c0_10] : memref<32x512xbf16, #tpu.memory_space<vmem>>, vector<32x96xbf16>
    %25 = arith.truncf %15 : vector<16x32xf32> to vector<16x32xbf16>
    %cst_11 = arith.constant dense<0.000000e+00> : vector<16x96xf32>
    %26 = tpu.matmul %25, %24, %cst_11 {dimension_numbers = #tpu.dot_dimension_numbers<[1], [0], [0], [1], [0, 0, 1, 1], [], []>} : vector<16x32xbf16>, vector<32x96xbf16>, vector<16x96xf32> -> vector<16x96xf32>
    %c0_12 = arith.constant 0 : index
    %c0_13 = arith.constant 0 : index
    %27 = vector.load %arg4[%c0_12, %c0_13] : memref<1x1280xf32, #tpu.memory_space<vmem>>, vector<1x96xf32>
    %28 = vector.broadcast %27 : vector<1x96xf32> to vector<16x96xf32>
    %29 = arith.addf %26, %28 : vector<16x96xf32>
    %c0_14 = arith.constant 0 : index
    %c128 = arith.constant 128 : index
    %30 = vector.load %arg4[%c0_14, %c128] : memref<1x1280xf32, #tpu.memory_space<vmem>>, vector<1x32xf32>
    %31 = vector.extract_strided_slice %29 {offsets = [0, 0], sizes = [16, 16], strides = [1, 1]} : vector<16x96xf32> to vector<16x16xf32>
    %32 = arith.truncf %31 : vector<16x16xf32> to vector<16x16xbf16>
    %33 = vector.extract_strided_slice %29 {offsets = [0, 32], sizes = [16, 16], strides = [1, 1]} : vector<16x96xf32> to vector<16x16xf32>
    %34 = arith.truncf %33 : vector<16x16xf32> to vector<16x16xbf16>
    %35 = vector.extract_strided_slice %29 {offsets = [0, 64], sizes = [16, 16], strides = [1, 1]} : vector<16x96xf32> to vector<16x16xf32>
    %36 = arith.truncf %35 : vector<16x16xf32> to vector<16x16xbf16>
    %cst_15 = arith.constant dense<0.000000e+00> : vector<16x16xf32>
    %37 = tpu.matmul %32, %34, %cst_15 {dimension_numbers = #tpu.dot_dimension_numbers<[1], [1], [0], [0], [0, 0, 1, 0], [], []>} : vector<16x16xbf16>, vector<16x16xbf16>, vector<16x16xf32> -> vector<16x16xf32>
    %38 = arith.addf %37, %23 : vector<16x16xf32>
    %cst_16 = arith.constant dense<0xFF800000> : vector<16xf32>
    %39 = vector.multi_reduction <maximumf>, %38, %cst_16 [1] : vector<16x16xf32> to vector<16xf32>
    %40 = vector.shape_cast %39 : vector<16xf32> to vector<16x1xf32>
    %41 = vector.broadcast %40 : vector<16x1xf32> to vector<16x16xf32>
    %42 = arith.subf %38, %41 : vector<16x16xf32>
    %43 = math.exp %42 : vector<16x16xf32>
    %cst_17 = arith.constant dense<0.000000e+00> : vector<16xf32>
    %44 = vector.multi_reduction <add>, %43, %cst_17 [1] : vector<16x16xf32> to vector<16xf32>
    %45 = vector.shape_cast %44 : vector<16xf32> to vector<16x1xf32>
    %46 = tpu.reciprocal %45 {approx = true} : vector<16x1xf32> -> vector<16x1xf32>
    %47 = vector.broadcast %46 : vector<16x1xf32> to vector<16x16xf32>
    %48 = arith.mulf %43, %47 : vector<16x16xf32>
    %49 = arith.truncf %48 : vector<16x16xf32> to vector<16x16xbf16>
    %cst_18 = arith.constant dense<0.000000e+00> : vector<16x16xf32>
    %50 = tpu.matmul %49, %36, %cst_18 {dimension_numbers = #tpu.dot_dimension_numbers<[1], [0], [0], [1], [0, 0, 1, 1], [], []>} : vector<16x16xbf16>, vector<16x16xbf16>, vector<16x16xf32> -> vector<16x16xf32>
    %c0_19 = arith.constant 0 : index
    %c128_20 = arith.constant 128 : index
    %51 = vector.load %arg3[%c0_19, %c128_20] : memref<32x512xbf16, #tpu.memory_space<vmem>>, vector<16x32xbf16>
    %52 = arith.truncf %50 : vector<16x16xf32> to vector<16x16xbf16>
    %cst_21 = arith.constant dense<0.000000e+00> : vector<16x32xf32>
    %53 = tpu.matmul %52, %51, %cst_21 {dimension_numbers = #tpu.dot_dimension_numbers<[1], [0], [0], [1], [0, 0, 1, 1], [], []>} : vector<16x16xbf16>, vector<16x32xbf16>, vector<16x32xf32> -> vector<16x32xf32>
    %54 = vector.broadcast %30 : vector<1x32xf32> to vector<16x32xf32>
    %55 = arith.addf %54, %53 : vector<16x32xf32>
    %56 = vector.extract_strided_slice %29 {offsets = [0, 16], sizes = [16, 16], strides = [1, 1]} : vector<16x96xf32> to vector<16x16xf32>
    %57 = arith.truncf %56 : vector<16x16xf32> to vector<16x16xbf16>
    %58 = vector.extract_strided_slice %29 {offsets = [0, 48], sizes = [16, 16], strides = [1, 1]} : vector<16x96xf32> to vector<16x16xf32>
    %59 = arith.truncf %58 : vector<16x16xf32> to vector<16x16xbf16>
    %60 = vector.extract_strided_slice %29 {offsets = [0, 80], sizes = [16, 16], strides = [1, 1]} : vector<16x96xf32> to vector<16x16xf32>
    %61 = arith.truncf %60 : vector<16x16xf32> to vector<16x16xbf16>
    %cst_22 = arith.constant dense<0.000000e+00> : vector<16x16xf32>
    %62 = tpu.matmul %57, %59, %cst_22 {dimension_numbers = #tpu.dot_dimension_numbers<[1], [1], [0], [0], [0, 0, 1, 0], [], []>} : vector<16x16xbf16>, vector<16x16xbf16>, vector<16x16xf32> -> vector<16x16xf32>
    %63 = arith.addf %62, %23 : vector<16x16xf32>
    %cst_23 = arith.constant dense<0xFF800000> : vector<16xf32>
    %64 = vector.multi_reduction <maximumf>, %63, %cst_23 [1] : vector<16x16xf32> to vector<16xf32>
    %65 = vector.shape_cast %64 : vector<16xf32> to vector<16x1xf32>
    %66 = vector.broadcast %65 : vector<16x1xf32> to vector<16x16xf32>
    %67 = arith.subf %63, %66 : vector<16x16xf32>
    %68 = math.exp %67 : vector<16x16xf32>
    %cst_24 = arith.constant dense<0.000000e+00> : vector<16xf32>
    %69 = vector.multi_reduction <add>, %68, %cst_24 [1] : vector<16x16xf32> to vector<16xf32>
    %70 = vector.shape_cast %69 : vector<16xf32> to vector<16x1xf32>
    %71 = tpu.reciprocal %70 {approx = true} : vector<16x1xf32> -> vector<16x1xf32>
    %72 = vector.broadcast %71 : vector<16x1xf32> to vector<16x16xf32>
    %73 = arith.mulf %68, %72 : vector<16x16xf32>
    %74 = arith.truncf %73 : vector<16x16xf32> to vector<16x16xbf16>
    %cst_25 = arith.constant dense<0.000000e+00> : vector<16x16xf32>
    %75 = tpu.matmul %74, %61, %cst_25 {dimension_numbers = #tpu.dot_dimension_numbers<[1], [0], [0], [1], [0, 0, 1, 1], [], []>} : vector<16x16xbf16>, vector<16x16xbf16>, vector<16x16xf32> -> vector<16x16xf32>
    %c16 = arith.constant 16 : index
    %c128_26 = arith.constant 128 : index
    %76 = vector.load %arg3[%c16, %c128_26] : memref<32x512xbf16, #tpu.memory_space<vmem>>, vector<16x32xbf16>
    %77 = arith.truncf %75 : vector<16x16xf32> to vector<16x16xbf16>
    %cst_27 = arith.constant dense<0.000000e+00> : vector<16x32xf32>
    %78 = tpu.matmul %77, %76, %cst_27 {dimension_numbers = #tpu.dot_dimension_numbers<[1], [0], [0], [1], [0, 0, 1, 1], [], []>} : vector<16x16xbf16>, vector<16x32xbf16>, vector<16x32xf32> -> vector<16x32xf32>
    %79 = arith.addf %55, %78 : vector<16x32xf32>
    %80 = arith.addf %15, %79 : vector<16x32xf32>
    %c0_28 = arith.constant 0 : index
    %c512 = arith.constant 512 : index
    %81 = vector.load %arg4[%c0_28, %c512] : memref<1x1280xf32, #tpu.memory_space<vmem>>, vector<1x32xf32>
    %c0_29 = arith.constant 0 : index
    %c640 = arith.constant 640 : index
    %82 = vector.load %arg4[%c0_29, %c640] : memref<1x1280xf32, #tpu.memory_space<vmem>>, vector<1x32xf32>
    %cst_30 = arith.constant dense<0.000000e+00> : vector<16xf32>
    %83 = vector.multi_reduction <add>, %80, %cst_30 [1] : vector<16x32xf32> to vector<16xf32>
    %84 = vector.shape_cast %83 : vector<16xf32> to vector<16x1xf32>
    %cst_31 = arith.constant 3.200000e+01 : f32
    %85 = vector.broadcast %cst_31 : f32 to vector<16x1xf32>
    %86 = arith.divf %84, %85 : vector<16x1xf32>
    %87 = vector.broadcast %86 : vector<16x1xf32> to vector<16x32xf32>
    %88 = arith.subf %80, %87 : vector<16x32xf32>
    %89 = arith.mulf %88, %88 : vector<16x32xf32>
    %cst_32 = arith.constant dense<0.000000e+00> : vector<16xf32>
    %90 = vector.multi_reduction <add>, %89, %cst_32 [1] : vector<16x32xf32> to vector<16xf32>
    %91 = vector.shape_cast %90 : vector<16xf32> to vector<16x1xf32>
    %cst_33 = arith.constant 3.200000e+01 : f32
    %92 = vector.broadcast %cst_33 : f32 to vector<16x1xf32>
    %93 = arith.divf %91, %92 : vector<16x1xf32>
    %94 = vector.broadcast %86 : vector<16x1xf32> to vector<16x32xf32>
    %95 = arith.subf %80, %94 : vector<16x32xf32>
    %cst_34 = arith.constant 9.99999996E-13 : f32
    %96 = vector.broadcast %cst_34 : f32 to vector<16x1xf32>
    %97 = arith.addf %93, %96 : vector<16x1xf32>
    %98 = math.rsqrt %97 : vector<16x1xf32>
    %99 = vector.broadcast %98 : vector<16x1xf32> to vector<16x32xf32>
    %100 = arith.mulf %95, %99 : vector<16x32xf32>
    %101 = vector.broadcast %81 : vector<1x32xf32> to vector<16x32xf32>
    %102 = arith.mulf %100, %101 : vector<16x32xf32>
    %103 = vector.broadcast %82 : vector<1x32xf32> to vector<16x32xf32>
    %104 = arith.addf %102, %103 : vector<16x32xf32>
    %c0_35 = arith.constant 0 : index
    %c256 = arith.constant 256 : index
    %105 = vector.load %arg3[%c0_35, %c256] : memref<32x512xbf16, #tpu.memory_space<vmem>>, vector<32x128xbf16>
    %106 = arith.truncf %104 : vector<16x32xf32> to vector<16x32xbf16>
    %cst_36 = arith.constant dense<0.000000e+00> : vector<16x128xf32>
    %107 = tpu.matmul %106, %105, %cst_36 {dimension_numbers = #tpu.dot_dimension_numbers<[1], [0], [0], [1], [0, 0, 1, 1], [], []>} : vector<16x32xbf16>, vector<32x128xbf16>, vector<16x128xf32> -> vector<16x128xf32>
    %c0_37 = arith.constant 0 : index
    %c256_38 = arith.constant 256 : index
    %108 = vector.load %arg4[%c0_37, %c256_38] : memref<1x1280xf32, #tpu.memory_space<vmem>>, vector<1x128xf32>
    %109 = vector.broadcast %108 : vector<1x128xf32> to vector<16x128xf32>
    %110 = arith.addf %107, %109 : vector<16x128xf32>
    %111 = arith.mulf %110, %110 : vector<16x128xf32>
    %112 = arith.mulf %110, %111 : vector<16x128xf32>
    %cst_39 = arith.constant 4.471500e-02 : f32
    %113 = vector.broadcast %cst_39 : f32 to vector<16x128xf32>
    %114 = arith.mulf %113, %112 : vector<16x128xf32>
    %115 = arith.addf %110, %114 : vector<16x128xf32>
    %cst_40 = arith.constant 0.797884583 : f32
    %116 = vector.broadcast %cst_40 : f32 to vector<16x128xf32>
    %117 = arith.mulf %116, %115 : vector<16x128xf32>
    %118 = math.tanh %117 : vector<16x128xf32>
    %cst_41 = arith.constant 1.000000e+00 : f32
    %119 = vector.broadcast %cst_41 : f32 to vector<16x128xf32>
    %120 = arith.addf %119, %118 : vector<16x128xf32>
    %cst_42 = arith.constant 5.000000e-01 : f32
    %121 = vector.broadcast %cst_42 : f32 to vector<16x128xf32>
    %122 = arith.mulf %121, %120 : vector<16x128xf32>
    %123 = arith.mulf %110, %122 : vector<16x128xf32>
    %c80 = arith.constant 80 : index
    %c0_43 = arith.constant 0 : index
    %124 = vector.load %arg2[%c80, %c0_43] : memref<320x32xbf16, #tpu.memory_space<vmem>>, vector<128x32xbf16>
    %125 = arith.truncf %123 : vector<16x128xf32> to vector<16x128xbf16>
    %cst_44 = arith.constant dense<0.000000e+00> : vector<16x32xf32>
    %126 = tpu.matmul %125, %124, %cst_44 {dimension_numbers = #tpu.dot_dimension_numbers<[1], [0], [0], [1], [0, 0, 1, 1], [], []>} : vector<16x128xbf16>, vector<128x32xbf16>, vector<16x32xf32> -> vector<16x32xf32>
    %c0_45 = arith.constant 0 : index
    %c384 = arith.constant 384 : index
    %127 = vector.load %arg4[%c0_45, %c384] : memref<1x1280xf32, #tpu.memory_space<vmem>>, vector<1x32xf32>
    %128 = vector.broadcast %127 : vector<1x32xf32> to vector<16x32xf32>
    %129 = arith.addf %126, %128 : vector<16x32xf32>
    %130 = arith.addf %104, %129 : vector<16x32xf32>
    %c0_46 = arith.constant 0 : index
    %c768 = arith.constant 768 : index
    %131 = vector.load %arg4[%c0_46, %c768] : memref<1x1280xf32, #tpu.memory_space<vmem>>, vector<1x32xf32>
    %c0_47 = arith.constant 0 : index
    %c896 = arith.constant 896 : index
    %132 = vector.load %arg4[%c0_47, %c896] : memref<1x1280xf32, #tpu.memory_space<vmem>>, vector<1x32xf32>
    %cst_48 = arith.constant dense<0.000000e+00> : vector<16xf32>
    %133 = vector.multi_reduction <add>, %130, %cst_48 [1] : vector<16x32xf32> to vector<16xf32>
    %134 = vector.shape_cast %133 : vector<16xf32> to vector<16x1xf32>
    %cst_49 = arith.constant 3.200000e+01 : f32
    %135 = vector.broadcast %cst_49 : f32 to vector<16x1xf32>
    %136 = arith.divf %134, %135 : vector<16x1xf32>
    %137 = vector.broadcast %136 : vector<16x1xf32> to vector<16x32xf32>
    %138 = arith.subf %130, %137 : vector<16x32xf32>
    %139 = arith.mulf %138, %138 : vector<16x32xf32>
    %cst_50 = arith.constant dense<0.000000e+00> : vector<16xf32>
    %140 = vector.multi_reduction <add>, %139, %cst_50 [1] : vector<16x32xf32> to vector<16xf32>
    %141 = vector.shape_cast %140 : vector<16xf32> to vector<16x1xf32>
    %cst_51 = arith.constant 3.200000e+01 : f32
    %142 = vector.broadcast %cst_51 : f32 to vector<16x1xf32>
    %143 = arith.divf %141, %142 : vector<16x1xf32>
    %144 = vector.broadcast %136 : vector<16x1xf32> to vector<16x32xf32>
    %145 = arith.subf %130, %144 : vector<16x32xf32>
    %cst_52 = arith.constant 9.99999996E-13 : f32
    %146 = vector.broadcast %cst_52 : f32 to vector<16x1xf32>
    %147 = arith.addf %143, %146 : vector<16x1xf32>
    %148 = math.rsqrt %147 : vector<16x1xf32>
    %149 = vector.broadcast %148 : vector<16x1xf32> to vector<16x32xf32>
    %150 = arith.mulf %145, %149 : vector<16x32xf32>
    %151 = vector.broadcast %131 : vector<1x32xf32> to vector<16x32xf32>
    %152 = arith.mulf %150, %151 : vector<16x32xf32>
    %153 = vector.broadcast %132 : vector<1x32xf32> to vector<16x32xf32>
    %154 = arith.addf %152, %153 : vector<16x32xf32>
    %c16_53 = arith.constant 16 : index
    %c0_54 = arith.constant 0 : index
    %155 = vector.load %arg5[%c16_53, %c0_54] : memref<18x16xf32, #tpu.memory_space<vmem>>, vector<2x16xf32>
    %156 = arith.truncf %155 : vector<2x16xf32> to vector<2x16xbf16>
    %157 = arith.truncf %154 : vector<16x32xf32> to vector<16x32xbf16>
    %cst_55 = arith.constant dense<0.000000e+00> : vector<2x32xf32>
    %158 = tpu.matmul %156, %157, %cst_55 {dimension_numbers = #tpu.dot_dimension_numbers<[1], [0], [0], [1], [0, 0, 1, 1], [], []>} : vector<2x16xbf16>, vector<16x32xbf16>, vector<2x32xf32> -> vector<2x32xf32>
    %c0_56 = arith.constant 0 : index
    %c384_57 = arith.constant 384 : index
    %159 = vector.load %arg3[%c0_56, %c384_57] : memref<32x512xbf16, #tpu.memory_space<vmem>>, vector<32x100xbf16>
    %160 = arith.truncf %158 : vector<2x32xf32> to vector<2x32xbf16>
    %cst_58 = arith.constant dense<0.000000e+00> : vector<2x100xf32>
    %161 = tpu.matmul %160, %159, %cst_58 {dimension_numbers = #tpu.dot_dimension_numbers<[1], [0], [0], [1], [0, 0, 1, 1], [], []>} : vector<2x32xbf16>, vector<32x100xbf16>, vector<2x100xf32> -> vector<2x100xf32>
    %c0_59 = arith.constant 0 : index
    %c1024 = arith.constant 1024 : index
    %162 = vector.load %arg4[%c0_59, %c1024] : memref<1x1280xf32, #tpu.memory_space<vmem>>, vector<1x100xf32>
    %163 = vector.broadcast %162 : vector<1x100xf32> to vector<2x100xf32>
    %164 = arith.addf %161, %163 : vector<2x100xf32>
    %cst_60 = arith.constant 0.000000e+00 : f32
    %165 = vector.broadcast %cst_60 : f32 to vector<2x100xf32>
    %166 = arith.maximumf %164, %165 : vector<2x100xf32>
    %c208 = arith.constant 208 : index
    %c0_61 = arith.constant 0 : index
    %167 = vector.load %arg2[%c208, %c0_61] : memref<320x32xbf16, #tpu.memory_space<vmem>>, vector<100x32xbf16>
    %168 = arith.truncf %166 : vector<2x100xf32> to vector<2x100xbf16>
    %cst_62 = arith.constant dense<0.000000e+00> : vector<2x32xf32>
    %169 = tpu.matmul %168, %167, %cst_62 {dimension_numbers = #tpu.dot_dimension_numbers<[1], [0], [0], [1], [0, 0, 1, 1], [], []>} : vector<2x100xbf16>, vector<100x32xbf16>, vector<2x32xf32> -> vector<2x32xf32>
    %170 = vector.extract_strided_slice %169 {offsets = [0, 0], sizes = [2, 2], strides = [1, 1]} : vector<2x32xf32> to vector<2x2xf32>
    %c0_63 = arith.constant 0 : index
    %c1152 = arith.constant 1152 : index
    %171 = vector.load %arg4[%c0_63, %c1152] : memref<1x1280xf32, #tpu.memory_space<vmem>>, vector<1x2xf32>
    %172 = vector.broadcast %171 : vector<1x2xf32> to vector<2x2xf32>
    %173 = arith.addf %170, %172 : vector<2x2xf32>
    %c0_64 = arith.constant 0 : index
    %c0_65 = arith.constant 0 : index
    %174 = vector.load %arg6[%c0_64, %c0_65] : memref<2x2xf32, #tpu.memory_space<vmem>>, vector<2x2xf32>
    tpu.vector_store %arg6[%c0_64, %c0_65], %173 {strides = array<i32>} : memref<2x2xf32, #tpu.memory_space<vmem>>, vector<2x2xf32>,
    return
  }
}

</mosaic_0001>

<bundles_post_ra>
// kernel: tpu_custom_call.1
= control target key start
LH: loop header
LB: loop body
LE: loop exit
PB: predicated region body
PF: predicated region fallthrough
CT: control target
= control target key end

     0   :  { %v1418_v1 = vmov 0   ;;  %v1419_v2 = vmov 0.0   ;;  %vm93_vm0 = vcmask 1043456   ;;  %vm1420_vm1 = vmmov 0   ;;  %s1727_s0 = inlined_call_operand.vmem [shape: s32[16,1], index: 0, kind: input, shape index: {}]   ;;  %s1728_s1 = inlined_call_operand.vmem [shape: f32[1,16], index: 1, kind: input, shape index: {}]   ;;  %s1729_s2 = inlined_call_operand.vmem [shape: bf16[320,32], index: 2, kind: input, shape index: {}]   ;;  %s1730_s3 = inlined_call_operand.vmem [shape: bf16[32,512], index: 3, kind: input, shape index: {}]   ;;  %s1731_s4 = inlined_call_operand.vmem [shape: f32[1,1280], index: 4, kind: input, shape index: {}]   ;;  %s1732_s5 = inlined_call_operand.vmem [shape: f32[18,16], index: 5, kind: input, shape index: {}]   ;;  %s1733_s6 = inlined_call_operand.hbm [shape: f32[2,2], index: 6, kind: output, shape index: {}]  }
   0x1   :  { %v25_v0 = vld [vmem:[%s1727_s0] sm:$0xff]  ;;  %1337 = vset.pattern.permute.xlu0 %v1418_v1  ;;  %1210 = vmatprep.subr.bf16.mxu0 %v1419_v2  ;;  %v26_v4 = vld [vmem:[%s1727_s0 + $0x8] sm:$0xff]  ;;  %v1340_v7 = vld [vmem:[%s1729_s2 + $0x10] sm:$0xff]  }
   0x2   :  { %v1338_v3 = vld [vmem:[%s1729_s2] sm:$0xff]   ;;  %33 = vperm.xlu0 %1337, %v25_v0   ;;  %1224 = vmatprep.subr.bf16.mxu1 %v1419_v2  ;;  %v1339_v5 = vld [vmem:[%s1729_s2 + $0x8] sm:$0xff]   ;;  %v1341_v8 = vld [vmem:[%s1729_s2 + $0x18] sm:$0xff]  }
   0x3   :  { %1211 = vmatpush3.bf16.msra.mxu0 %v1338_v3  ;;  %v1342_v6 = vld [vmem:[%s1729_s2 + $0x20] ss:$0 sps:$4 sm:$0xff]   ;;  %1220 = vmatprep.mubr.msk.bf16.mxu0 %vm1420_vm1, %v1419_v2 }
   0x4   :  { %1212 = vmatprep.subr.bf16.mxu0 %v1419_v2  ;;  %v95_v9 = vsel %vm93_vm0, %v1342_v6, 0  ;;  %1228 = vmatprep.mubr.msk.bf16.mxu1 %vm1420_vm1, %v1419_v2  ;;  %v1343_v10 = vld [vmem:[%s1730_s3] ss:$16 sps:$4 sm:$0xff]  }
   0x5   :  { %1225 = vmatpush3.bf16.msra.mxu1 %v1343_v10 }
   0x6   :  { %36 = vperm.xlu0 %1337, %v26_v4   ;;  %1226 = vmatprep.subr.bf16.mxu1 %v1419_v2 }
   0x7   :  { %1213 = vmatpush3.bf16.msra.mxu0 %v1339_v5 }
   0x8   :  { %1214 = vmatprep.subr.bf16.mxu0 %v1419_v2 }
   0xb   :  { %1215 = vmatpush3.bf16.msra.mxu0 %v1340_v7 }
   0xc   :  { %1216 = vmatprep.subr.bf16.mxu0 %v1419_v2 }
   0xf   :  { %1217 = vmatpush3.bf16.msra.mxu0 %v1341_v8 }
  0x10   :  { %1218 = vmatprep.subr.bf16.mxu0 %v1419_v2 }
  0x13   :  { %1219 = vmatpush3.bf16.msra.mxu0 %v95_v9 }
  0x14   :  { %1256 = vmatprep.subr.bf16.mxu0 %v1419_v2 }
  0x15   :  { %11 = vsyncpa [#allocation3], 0  ;;  %v27_v11 = vlaneseq  ;;  %vm89_vm8 = vcmask 588800   ;;  %v1344_v24 = vld [vmem:[%s1730_s3 + $0x20] ss:$16 sps:$4 sm:$0xff]   ;;  %vm175_vm9 = vcmask 261120  }
  0x16   :  { %1227 = vmatpush3.bf16.msra.mxu1 %v1344_v24  ;;  %v1120_v30 = vld [vmem:[%s1731_s4] ss:$0 sm:$0xff]  ;;  %s1421_s16 = smov 96   ;;  %vm225_vm10 = vcmask 130048   ;;  %v142_v46 = vld [vmem:[%s1732_s5 + $0x8] sm:$0xff]  ;;  %s1423_s23 = smov 64  }
  0x17   :  { %v30_v12 = vshrl.u32 %v27_v11, 7  ;;  %v28_v16 = vand.u32 127, %v27_v11  ;;  %1232 = vmatprep.subr.bf16.mxu1 %v1419_v2  ;;  %v138_v40 = vld [vmem:[%s1728_s1] sm:$0x1]  ;;  %s1422_s1 = smov 80   ;;  %s1424_s24 = smov 112  }
  0x18   :  { %v1119_v41 = vadd.f32 -1.0, %v138_v40  ;;  %v141_v45 = vld [vmem:[%s1732_s5] sm:$0xff]  ;;  %s1425_s27 = smov 48   ;;  %vm1043_vm11 = vcmask 1041408   ;;  %vm1039_vm12 = vcmask 818176   ;;  %vm1095_vm13 = vcmask 9216  }
  0x19   :  { %v31_v13 = vadd.s32 8, %v30_v12  ;;  %v40_v14 = vand.u32 7, %v30_v12  ;;  %v146_v43 = vsub.s32 0, %v30_v12  ;;  %v1345_v11 = vld [vmem:[%s1730_s3 + $0x4] ss:$16 sps:$4 sm:$0xff]  }
  0x1a   :  { %v140_v42 = vmul.f32 1e+09, %v1119_v41 }
  0x1b   :  { %v41_v15 = vand.u32 7, %v31_v13  ;;  %v42_v17 = vadd.s32 64, %v40_v14 }
  0x1c   :  { %v147_v44 = vrot.slane %v140_v42, %v146_v43 }
  0x1d   :  { %v43_v18 = vadd.s32 64, %v41_v15  ;;  %vm44_vm2 = vcmp.eq.s32.totalorder %v28_v16, %v42_v17 }
  0x1e   :  { %v1536_v47 = vadd.f32 %v147_v44, %v141_v45  ;;  %v1538_v48 = vadd.f32 %v147_v44, %v142_v46 }
  0x1f   :  { %vm45_vm4 = vcmp.eq.s32.totalorder %v28_v16, %v43_v18 }
  0x81   :  { %v34_v19 = vpop.permute.xlu0 %33 }
  0x82   :  { %vm38_vm3 = vcmp.eq.s32.totalorder %v28_v16, %v34_v19 }
  0x83   :  { %vm46_vm5 = vmor %vm38_vm3, %vm44_vm2 }
  0x84   :  { %v1111_v21 = vsel %vm46_vm5, 1.0, %v1419_v2 }
  0x85   :  { %v37_v20 = vpop.permute.xlu0 %36 }
  0x86   :  { %vm39_vm6 = vcmp.eq.s32.totalorder %v28_v16, %v37_v20 }
  0x87   :  { %vm47_vm7 = vmor %vm39_vm6, %vm45_vm4 }
  0x88   :  { %v1112_v22 = vsel %vm47_vm7, 1.0, %v1419_v2 }
  0x89   :  { %v52_v23 = vpack.c.bf16 %v1112_v22, %v1111_v21 }
  0x8b   :  { %1221 = vmatmul.mubr.msk.bf16.vlgmr.msra.gmra.mrb[0].mxu0 %vm89_vm8, %v52_v23 }
  0x8c   :  { %1258 = vmatprep.mubr.msk.bf16.mxu0 %vm1420_vm1, %v1419_v2 }
 0x15e   :  { %v1506_v25 = vpop.f32.mrb[0].mxu0 }
 0x15f   :  { %v1222_v26 = vpop.f32.mrb[1].mxu0 }
 0x160   :  { %v1508_v27 = vpop.f32.mrb[2].mxu0 }
 0x161   :  { %v155_v28 = vpack.c.bf16 %v1508_v27, %v1506_v25  ;;  %v1223_v29 = vpop.f32.mrb[3].mxu0 }
 0x163   :  { %1229 = vmatmul.mubr.msk.bf16.vlgmr.msra.gmra.mrb[0].mxu1 %vm175_vm9, %v155_v28 }
 0x164   :  { %1234 = vmatprep.mubr.msk.bf16.mxu1 %vm1420_vm1, %v1419_v2 }
 0x236   :  { %v213_v31 = vpop.f32.mrb[0].mxu1 }
 0x237   :  { %v1230_v32 = vpop.f32.mrb[1].mxu1  ;;  %v214_v34 = vadd.f32 %v1120_v30, %v213_v31 }
 0x238   :  { %v216_v33 = vpop.f32.mrb[2].mxu1 }
 0x239   :  { %v217_v35 = vadd.f32 %v1120_v30, %v216_v33  ;;  %v1231_v36 = vpop.f32.mrb[3].mxu1 }
 0x23b   :  { %v1518_v37 = vpack.c.bf16 %v217_v35, %v214_v34 }
 0x23d   :  { %223 = vrot.lane.b32.xlu1 %v1518_v37, %s1421_s16 }
 0x2af   :  { %v224_v38 = vpop.permute.xlu1 %223 }
 0x2b0   :  { %v230_v39 = vsel %vm225_vm10, %v224_v38, 0 }
 0x2b1   :  { %1233 = vmatpush3.bf16.xpose.msra.mxu1 %v230_v39 }
 0x2b2   :  { %1238 = vmatprep.subr.bf16.mxu1 %v1419_v2 }
 0x2b8   :  { %1235 = vmatmul.mubr.msk.bf16.vlgmr.msra.gmra.mrb[4].mxu1 %vm225_vm10, %v1518_v37 }
 0x2b9   :  { %1240 = vmatprep.mubr.msk.bf16.mxu1 %vm1420_vm1, %v1419_v2 }
 0x38b   :  { %v266_v49 = vpop.f32.mrb[4].mxu1 }
 0x38c   :  { %v267_v50 = vadd.f32 %v266_v49, %v1536_v47  ;;  %v1236_v51 = vpop.f32.mrb[5].mxu1 }
 0x38d   :  { %v269_v52 = vpop.f32.mrb[6].mxu1 }
 0x38e   :  { %v270_v53 = vadd.f32 %v269_v52, %v1538_v48  ;;  %v1237_v54 = vpop.f32.mrb[7].mxu1  ;;  %v273_v55 = vsel %vm225_vm10, %v267_v50, -inf }
 0x38f   :  { %274 = vmax.xlane.f32.xlu1 %v273_v55 }
 0x390   :  { %v276_v56 = vsel %vm225_vm10, %v270_v53, -inf }
 0x391   :  { %277 = vmax.xlane.f32.xlu0 %v276_v56 }
 0x41c   :  { %v275_v57 = vpop.xlane.xlu1 %274 }
 0x41d   :  { %v279_v58 = vsub.f32 %v267_v50, %v275_v57 }
 0x41e   :  { %v278_v59 = vpop.xlane.xlu0 %277 }
 0x41f   :  { %v281_v60 = vmul.f32 1.442695, %v279_v58  ;;  %v280_v61 = vsub.f32 %v270_v53, %v278_v59  ;;  %v1346_v53 = vld [vmem:[%s1730_s3 + $0x24] ss:$16 sps:$4 sm:$0xff]   ;;  %v1128_v59 = vld [vmem:[%s1731_s4 + $0x1] ss:$0 sm:$0xff] }
 0x421   :  { %1366 = vpow2.f32 %v281_v60  ;;  %v283_v62 = vmul.f32 1.442695, %v280_v61 }
 0x423   :  { %1368 = vpow2.f32 %v283_v62 }
 0x42b   :  { %v1367_v63 = vpop.eup %1366 }
 0x42c   :  { %v285_v0 = vsel %vm225_vm10, %v1367_v63, 0.0 }
 0x42d   :  { %v1369_v1 = vpop.eup %1368  ;;  %286 = vadd.xlane.f32.xlu0 %v285_v0 }
 0x42e   :  { %v288_v3 = vsel %vm225_vm10, %v1369_v1, 0.0 }
 0x42f   :  { %289 = vadd.xlane.f32.xlu1 %v288_v3 }
 0x440   :  { %406 = vrot.lane.b32.xlu1 %v1518_v37, %s1422_s1 }
 0x443   :  { %296 = vrot.lane.b32.xlu0 %v1518_v37, %s1423_s23 }
 0x444   :  { %404 = vrot.lane.b32.xlu1 %v1518_v37, %s1424_s24 }
 0x4ba   :  { %v287_v4 = vpop.xlane.xlu0 %286 }
 0x4bb   :  { %1370 = vrcp.f32 %v287_v4 }
 0x4bc   :  { %v290_v5 = vpop.xlane.xlu1 %289 }
 0x4bd   :  { %1372 = vrcp.f32 %v290_v5 }
 0x4be   :  { %v297_v6 = vpop.permute.xlu0 %296 }
 0x4bf   :  { %1239 = vmatpush3.bf16.msra.mxu1 %v297_v6 }
 0x4c0   :  { %1244 = vmatprep.subr.bf16.mxu1 %v1419_v2  ;;  %v407_v15 = vpop.permute.xlu1 %406 }
 0x4c1   :  { %v412_v19 = vsel %vm225_vm10, %v407_v15, 0 }
 0x4c4   :  { %v405_v20 = vpop.permute.xlu1 %404 }
 0x4c5   :  { %v1371_v7 = vpop.eup %1370 }
 0x4c6   :  { %v293_v9 = vmul.f32 %v1371_v7, %v1367_v63 }
 0x4c7   :  { %v1373_v8 = vpop.eup %1372 }
 0x4c8   :  { %v294_v10 = vmul.f32 %v1373_v8, %v1369_v1 }
 0x4ca   :  { %v295_v12 = vpack.c.bf16 %v294_v10, %v293_v9 }
 0x4cc   :  { %1241 = vmatmul.mubr.msk.bf16.vlgmr.msra.gmra.mrb[8].mxu1 %vm225_vm10, %v295_v12 }
 0x4cd   :  { %1245 = vmatpush3.bf16.msra.mxu1 %v1345_v11  ;;  %1246 = vmatprep.mubr.msk.bf16.mxu1 %vm1420_vm1, %v1419_v2 }
 0x4ce   :  { %1250 = vmatprep.subr.bf16.mxu1 %v1419_v2 }
 0x59f   :  { %v336_v13 = vpop.f32.mrb[8].mxu1 }
 0x5a0   :  { %v1242_v14 = vpop.f32.mrb[9].mxu1 }
 0x5a1   :  { %v339_v16 = vpop.f32.mrb[10].mxu1 }
 0x5a2   :  { %v345_v17 = vpack.c.bf16 %v339_v16, %v336_v13  ;;  %v1243_v18 = vpop.f32.mrb[11].mxu1 }
 0x5a3   :  { %v1348_v18 = vld [vmem:[%s1730_s3 + $0x28] ss:$16 sps:$4 sm:$0xff]  }
 0x5a4   :  { %1247 = vmatmul.mubr.msk.bf16.vlgmr.msra.gmra.mrb[12].mxu1 %vm225_vm10, %v345_v17 }
 0x5a5   :  { %1251 = vmatpush3.bf16.xpose.msra.mxu1 %v412_v19  ;;  %1252 = vmatprep.mubr.msk.bf16.mxu1 %vm1420_vm1, %v1419_v2 }
 0x5a6   :  { %1262 = vmatprep.subr.bf16.mxu1 %v1419_v2 }
 0x5ac   :  { %1253 = vmatmul.mubr.msk.bf16.vlgmr.msra.gmra.mrb[16].mxu1 %vm225_vm10, %v405_v20 }
 0x5ad   :  { %1264 = vmatprep.mubr.msk.bf16.mxu1 %vm1420_vm1, %v1419_v2  ;;  %1263 = vmatpush3.bf16.msra.mxu1 %v1346_v53 }
 0x5ae   :  { %1276 = vmatprep.subr.bf16.mxu1 %v1419_v2 }
 0x677   :  { %v389_v21 = vpop.f32.mrb[12].mxu1 }
 0x678   :  { %v1248_v22 = vpop.f32.mrb[13].mxu1  ;;  %v402_v60 = vadd.f32 %v1128_v59, %v389_v21 }
 0x679   :  { %v392_v23 = vpop.f32.mrb[14].mxu1 }
 0x67a   :  { %v1249_v24 = vpop.f32.mrb[15].mxu1  ;;  %v403_v62 = vadd.f32 %v1128_v59, %v392_v23 }
 0x67f   :  { %v448_v26 = vpop.f32.mrb[16].mxu1 }
 0x680   :  { %v449_v28 = vadd.f32 %v448_v26, %v1536_v47  ;;  %v1254_v29 = vpop.f32.mrb[17].mxu1 }
 0x681   :  { %v451_v30 = vpop.f32.mrb[18].mxu1  ;;  %v1133_v29 = vld [vmem:[%s1731_s4 + $0x4] ss:$0 sm:$0xff] }
 0x682   :  { %v452_v31 = vadd.f32 %v451_v30, %v1538_v48  ;;  %v1255_v32 = vpop.f32.mrb[19].mxu1  ;;  %v455_v33 = vsel %vm225_vm10, %v449_v28, -inf }
 0x683   :  { %456 = vmax.xlane.f32.xlu0 %v455_v33  ;;  %v1134_v33 = vld [vmem:[%s1731_s4 + $0x5] ss:$0 sm:$0xff] }
 0x684   :  { %v458_v34 = vsel %vm225_vm10, %v452_v31, -inf }
 0x685   :  { %459 = vmax.xlane.f32.xlu1 %v458_v34 }
 0x696   :  { %478 = vrot.lane.b32.xlu1 %v1518_v37, %s1425_s27 }
 0x710   :  { %v457_v35 = vpop.xlane.xlu0 %456 }
 0x711   :  { %v461_v36 = vsub.f32 %v449_v28, %v457_v35 }
 0x712   :  { %v460_v38 = vpop.xlane.xlu1 %459 }
 0x713   :  { %v463_v39 = vmul.f32 1.442695, %v461_v36  ;;  %v462_v40 = vsub.f32 %v452_v31, %v460_v38 }
 0x715   :  { %1374 = vpow2.f32 %v463_v39  ;;  %v465_v41 = vmul.f32 1.442695, %v462_v40  ;;  %v1349_v39 = vld [vmem:[%s1729_s2 + $0x28] sm:$0xff]   ;;  %v1350_v40 = vld [vmem:[%s1729_s2 + $0x30] sm:$0xff]  }
 0x716   :  { %v479_v42 = vpop.permute.xlu1 %478 }
 0x717   :  { %1376 = vpow2.f32 %v465_v41  ;;  %1257 = vmatpush3.bf16.msra.mxu0 %v479_v42  ;;  %v1351_v41 = vld [vmem:[%s1729_s2 + $0x38] sm:$0xff]   ;;  %v1352_v42 = vld [vmem:[%s1729_s2 + $0x40] sm:$0xff]  }
 0x718   :  { %1268 = vmatprep.subr.bf16.mxu0 %v1419_v2 }
 0x71f   :  { %v1375_v43 = vpop.eup %1374 }
 0x720   :  { %v467_v44 = vsel %vm225_vm10, %v1375_v43, 0.0 }
 0x721   :  { %v1377_v45 = vpop.eup %1376  ;;  %468 = vadd.xlane.f32.xlu0 %v467_v44  ;;  %v1354_v44 = vld [vmem:[%s1729_s2 + $0x50] sm:$0xff]  }
 0x722   :  { %v470_v46 = vsel %vm225_vm10, %v1377_v45, 0.0 }
 0x725   :  { %471 = vadd.xlane.f32.xlu0 %v470_v46  ;;  %v1356_v46 = vld [vmem:[%s1729_s2 + $0x60] sm:$0xff]  }
 0x7ae   :  { %v469_v37 = vpop.xlane.xlu0 %468 }
 0x7af   :  { %1378 = vrcp.f32 %v469_v37  ;;  %v1135_v37 = vld [vmem:[%s1731_s4 + $0x2] ss:$0 sm:$0xff] }
 0x7b2   :  { %v472_v47 = vpop.xlane.xlu0 %471 }
 0x7b3   :  { %1380 = vrcp.f32 %v472_v47 }
 0x7b9   :  { %v1379_v48 = vpop.eup %1378 }
 0x7ba   :  { %v475_v50 = vmul.f32 %v1379_v48, %v1375_v43  ;;  %v1353_v43 = vld [vmem:[%s1729_s2 + $0x48] sm:$0xff]  }
 0x7bd   :  { %v1381_v49 = vpop.eup %1380 }
 0x7be   :  { %v476_v51 = vmul.f32 %v1381_v49, %v1377_v45  ;;  %v1355_v45 = vld [vmem:[%s1729_s2 + $0x58] sm:$0xff]  }
 0x7c0   :  { %v477_v52 = vpack.c.bf16 %v476_v51, %v475_v50 }
 0x7c2   :  { %1259 = vmatmul.mubr.msk.bf16.vlgmr.msra.gmra.mrb[4].mxu0 %vm225_vm10, %v477_v52 }
 0x7c3   :  { %1272 = vmatprep.mubr.msk.bf16.mxu0 %vm1420_vm1, %v1419_v2 }
 0x895   :  { %v518_v54 = vpop.f32.mrb[4].mxu0 }
 0x896   :  { %v1260_v55 = vpop.f32.mrb[5].mxu0 }
 0x897   :  { %v521_v56 = vpop.f32.mrb[6].mxu0 }
 0x898   :  { %v527_v57 = vpack.c.bf16 %v521_v56, %v518_v54  ;;  %v1261_v58 = vpop.f32.mrb[7].mxu0 }
 0x89a   :  { %1265 = vmatmul.mubr.msk.bf16.vlgmr.msra.gmra.mrb[20].mxu1 %vm225_vm10, %v527_v57 }
 0x89b   :  { %1292 = vmatprep.mubr.msk.bf16.mxu1 %vm1420_vm1, %v1419_v2  ;;  %1277 = vmatpush3.bf16.msra.mxu1 %v1349_v39  ;;  %v1148_v39 = vld [vmem:[%s1731_s4 + $0x6] ss:$0 sm:$0xff] }
 0x89c   :  { %1278 = vmatprep.subr.bf16.mxu1 %v1419_v2 }
 0x89f   :  { %1279 = vmatpush3.bf16.msra.mxu1 %v1350_v40 }
 0x8a0   :  { %1280 = vmatprep.subr.bf16.mxu1 %v1419_v2 }
 0x8a3   :  { %1281 = vmatpush3.bf16.msra.mxu1 %v1351_v41 }
 0x8a4   :  { %1282 = vmatprep.subr.bf16.mxu1 %v1419_v2 }
 0x8a7   :  { %1283 = vmatpush3.bf16.msra.mxu1 %v1352_v42 }
 0x8a8   :  { %1284 = vmatprep.subr.bf16.mxu1 %v1419_v2 }
 0x8ab   :  { %1285 = vmatpush3.bf16.msra.mxu1 %v1353_v43  ;;  %v1149_v43 = vld [vmem:[%s1731_s4 + $0x7] ss:$0 sm:$0xff] }
 0x8ac   :  { %1286 = vmatprep.subr.bf16.mxu1 %v1419_v2 }
 0x8af   :  { %1287 = vmatpush3.bf16.msra.mxu1 %v1354_v44 }
 0x8b0   :  { %1288 = vmatprep.subr.bf16.mxu1 %v1419_v2 }
 0x8b3   :  { %1289 = vmatpush3.bf16.msra.mxu1 %v1355_v45 }
 0x8b4   :  { %1290 = vmatprep.subr.bf16.mxu1 %v1419_v2 }
 0x8b7   :  { %1291 = vmatpush3.bf16.msra.mxu1 %v1356_v46 }
 0x96d   :  { %v571_v61 = vpop.f32.mrb[20].mxu1 }
 0x96e   :  { %v578_v63 = vadd.f32 %v571_v61, %v402_v60  ;;  %v1266_v0 = vpop.f32.mrb[21].mxu1 }
 0x96f   :  { %v574_v1 = vpop.f32.mrb[22].mxu1 }
 0x970   :  { %v579_v3 = vadd.f32 %v574_v1, %v403_v62  ;;  %v1267_v4 = vpop.f32.mrb[23].mxu1  ;;  %v580_v5 = vadd.f32 %v578_v63, %v1506_v25 }
 0x972   :  { %v584_v6 = vsel %vm175_vm9, %v580_v5, 0.0  ;;  %v581_v7 = vadd.f32 %v579_v3, %v1508_v27  ;;  %v1347_v27 = vld [vmem:[%s1730_s3 + $0x8] ss:$16 sps:$4 sm:$0xff]  }
 0x973   :  { %585 = vadd.xlane.f32.xlu0 %v584_v6  ;;  %1269 = vmatpush3.bf16.msra.mxu0 %v1347_v27 }
 0x974   :  { %v587_v8 = vsel %vm175_vm9, %v581_v7, 0.0  ;;  %1270 = vmatprep.subr.bf16.mxu0 %v1419_v2 }
 0x977   :  { %588 = vadd.xlane.f32.xlu0 %v587_v8  ;;  %1271 = vmatpush3.bf16.msra.mxu0 %v1348_v18 }
 0x978   :  { %1296 = vmatprep.subr.bf16.mxu0 %v1419_v2 }
 0xa00   :  { %v586_v9 = vpop.xlane.xlu0 %585 }
 0xa01   :  { %v591_v10 = vmul.f32 0.03125, %v586_v9  ;;  %v1139_v9 = vld [vmem:[%s1731_s4 + $0x3] ss:$0 sm:$0xff] }
 0xa03   :  { %v593_v11 = vsub.f32 %v580_v5, %v591_v10 }
 0xa04   :  { %v589_v12 = vpop.xlane.xlu0 %588 }
 0xa05   :  { %v592_v13 = vmul.f32 0.03125, %v589_v12  ;;  %v595_v14 = vmul.f32 %v593_v11, %v593_v11 }
 0xa07   :  { %v594_v15 = vsub.f32 %v581_v7, %v592_v13  ;;  %v597_v16 = vsel %vm175_vm9, %v595_v14, 0.0 }
 0xa08   :  { %598 = vadd.xlane.f32.xlu0 %v597_v16 }
 0xa09   :  { %v596_v17 = vmul.f32 %v594_v15, %v594_v15 }
 0xa0b   :  { %v600_v25 = vsel %vm175_vm9, %v596_v17, 0.0 }
 0xa0c   :  { %601 = vadd.xlane.f32.xlu0 %v600_v25 }
 0xa95   :  { %v599_v19 = vpop.xlane.xlu0 %598 }
 0xa96   :  { %v603_v20 = vmul.f32 0.03125, %v599_v19 }
 0xa98   :  { %v605_v21 = vadd.f32 1e-12, %v603_v20 }
 0xa99   :  { %v602_v22 = vpop.xlane.xlu0 %601 }
 0xa9a   :  { %1382 = vrsqrt.f32 %v605_v21  ;;  %v604_v23 = vmul.f32 0.03125, %v602_v22 }
 0xa9c   :  { %v606_v24 = vadd.f32 1e-12, %v604_v23 }
 0xa9e   :  { %1384 = vrsqrt.f32 %v606_v24 }
 0xaa4   :  { %v1383_v26 = vpop.eup %1382 }
 0xaa5   :  { %v609_v28 = vmul.f32 %v1383_v26, %v593_v11 }
 0xaa7   :  { %v617_v31 = vmul.f32 %v1133_v29, %v609_v28 }
 0xaa8   :  { %v1385_v30 = vpop.eup %1384 }
 0xaa9   :  { %v610_v32 = vmul.f32 %v1385_v30, %v594_v15  ;;  %v1606_v35 = vadd.f32 %v1134_v33, %v617_v31 }
 0xaab   :  { %v618_v34 = vmul.f32 %v1133_v29, %v610_v32 }
 0xaad   :  { %v1608_v36 = vadd.f32 %v1134_v33, %v618_v34 }
 0xaaf   :  { %v631_v38 = vpack.c.bf16 %v1608_v36, %v1606_v35 }
 0xab1   :  { %1273 = vmatmul.mubr.msk.bf16.vlgmr.msra.gmra.mrb[8].mxu0 %vm175_vm9, %v631_v38 }
 0xab2   :  { %1298 = vmatprep.mubr.msk.bf16.mxu0 %vm1420_vm1, %v1419_v2 }
 0xb84   :  { %v688_v47 = vpop.f32.mrb[8].mxu0 }
 0xb85   :  { %v689_v48 = vadd.f32 %v1135_v37, %v688_v47  ;;  %v1274_v49 = vpop.f32.mrb[9].mxu0 }
 0xb86   :  { %v691_v50 = vpop.f32.mrb[10].mxu0  ;;  %v1357_v49 = vld [vmem:[%s1730_s3 + $0xc] ss:$16 sps:$4 sm:$0xff]  }
 0xb87   :  { %v695_v51 = vmul.f32 %v689_v48, %v689_v48  ;;  %v692_v52 = vadd.f32 %v1135_v37, %v691_v50  ;;  %v1275_v53 = vpop.f32.mrb[11].mxu0  ;;  %v872_v37 = vld [vmem:[%s1732_s5 + $0x10] sm:$0x3]  ;;  %v1358_v50 = vld [vmem:[%s1730_s3 + $0x2c] ss:$16 sps:$4 sm:$0xff]  }
 0xb89   :  { %v697_v54 = vmul.f32 %v695_v51, %v689_v48  ;;  %v696_v55 = vmul.f32 %v692_v52, %v692_v52 }
 0xb8b   :  { %v699_v56 = vmul.f32 0.044715, %v697_v54  ;;  %v698_v57 = vmul.f32 %v696_v55, %v692_v52 }
 0xb8d   :  { %v701_v58 = vadd.f32 %v699_v56, %v689_v48  ;;  %v700_v59 = vmul.f32 0.044715, %v698_v57  ;;  %v1360_v57 = vld [vmem:[%s1729_s2 + $0x70] sm:$0xff]  }
 0xb8f   :  { %v703_v60 = vmul.f32 0.7978846, %v701_v58  ;;  %v702_v61 = vadd.f32 %v700_v59, %v692_v52  ;;  %v1361_v58 = vld [vmem:[%s1729_s2 + $0x78] sm:$0xff]   ;;  %v1362_v59 = vld [vmem:[%s1729_s2 + $0x80] sm:$0xff]  }
 0xb91   :  { %1386 = vtanh.f32 %v703_v60  ;;  %v704_v62 = vmul.f32 0.7978846, %v702_v61  ;;  %v1363_v60 = vld [vmem:[%s1729_s2 + $0x88] sm:$0xff]   ;;  %v1364_v61 = vld [vmem:[%s1729_s2 + $0x90] sm:$0xff]  }
 0xb93   :  { %1388 = vtanh.f32 %v704_v62  ;;  %v1365_v62 = vld [vmem:[%s1729_s2 + $0x98] ss:$0 sps:$4 sm:$0x33]  }
 0xb9b   :  { %v1387_v63 = vpop.eup %1386 }
 0xb9c   :  { %v707_v0 = vadd.f32 1.0, %v1387_v63  ;;  %v1045_v63 = vsel %vm1043_vm11, %v1365_v62, 0 }
 0xb9d   :  { %v1389_v1 = vpop.eup %1388 }
 0xb9e   :  { %v709_v3 = vmul.f32 0.5, %v707_v0  ;;  %v708_v4 = vadd.f32 1.0, %v1389_v1  ;;  %v1151_v0 = vld [vmem:[%s1731_s4 + $0x8] ss:$0 sm:$0xff] }
 0xba0   :  { %v710_v5 = vmul.f32 0.5, %v708_v4  ;;  %v711_v6 = vmul.f32 %v709_v3, %v689_v48  ;;  %v873_v48 = vpack.c.bf16 %v872_v37, %v872_v37 }
 0xba2   :  { %v712_v7 = vmul.f32 %v710_v5, %v692_v52  ;;  %v1359_v52 = vld [vmem:[%s1729_s2 + $0x68] sm:$0xff]   ;;  %s1426_s2 = smov [#allocation2]  }
 0xba3   :  { %s1103_s9 = sshll.u32 %s1426_s2, 4  ;;  %s1104_s9 = int_to_ptr.vmem [resolvable:$true] %s1103_s9 }
 0xba4   :  { %v729_v8 = vpack.c.bf16 %v712_v7, %v711_v6  ;;  %s1394_s10 = scalar_lea.vmem %s1104_s9, 32  ;;  %p1399_p1 = scmp.lt.s32.totalorder %s1104_s9, %s1104_s9 }
 0xba5   :  { %p1395_p0 = scmp.ne.s32.totalorder %s1104_s9, %s1394_s10  ;;  %p1400_p2 = scmp.lt.s32.totalorder %s1394_s10, %s1394_s10 }
 0xba6   :  { %1293 = vmatmul.mubr.bf16.vlgmr.msra.gmra.mrb[24].mxu1 %v729_v8 }
 0xba7   :  { %p1401_p3 = por %p1400_p2, %p1399_p1 }
 0xba9   :  { %p1402_p4 = pnand %p1401_p3, %p1395_p0 }
 0xc79   :  { %v819_v10 = vpop.f32.mrb[24].mxu1 }
 0xc7a   :  { %v820_v11 = vadd.f32 %v1139_v9, %v819_v10  ;;  %v1294_v12 = vpop.f32.mrb[25].mxu1 }
 0xc7b   :  { %v822_v13 = vpop.f32.mrb[26].mxu1 }
 0xc7c   :  { %v823_v14 = vadd.f32 %v1139_v9, %v822_v13  ;;  %v1295_v15 = vpop.f32.mrb[27].mxu1  ;;  %v826_v16 = vadd.f32 %v820_v11, %v1606_v35 }
 0xc7e   :  { %v830_v17 = vsel %vm175_vm9, %v826_v16, 0.0  ;;  %v827_v25 = vadd.f32 %v823_v14, %v1608_v36 }
 0xc7f   :  { %831 = vadd.xlane.f32.xlu1 %v830_v17 }
 0xc80   :  { %v833_v27 = vsel %vm175_vm9, %v827_v25, 0.0 }
 0xc81   :  { %834 = vadd.xlane.f32.xlu0 %v833_v27 }
 0xd0c   :  { %v832_v18 = vpop.xlane.xlu1 %831 }
 0xd0d   :  { %v836_v19 = vmul.f32 0.03125, %v832_v18 }
 0xd0e   :  { %v835_v20 = vpop.xlane.xlu0 %834 }
 0xd0f   :  { %v838_v21 = vsub.f32 %v826_v16, %v836_v19  ;;  %v837_v22 = vmul.f32 0.03125, %v835_v20 }
 0xd11   :  { %v839_v23 = vsub.f32 %v827_v25, %v837_v22  ;;  %v840_v24 = vmul.f32 %v838_v21, %v838_v21 }
 0xd13   :  { %v842_v26 = vsel %vm175_vm9, %v840_v24, 0.0  ;;  %v841_v28 = vmul.f32 %v839_v23, %v839_v23 }
 0xd14   :  { %843 = vadd.xlane.f32.xlu0 %v842_v26 }
 0xd15   :  { %v845_v29 = vsel %vm175_vm9, %v841_v28, 0.0 }
 0xd18   :  { %846 = vadd.xlane.f32.xlu0 %v845_v29 }
 0xda1   :  { %v844_v30 = vpop.xlane.xlu0 %843 }
 0xda2   :  { %v848_v31 = vmul.f32 0.03125, %v844_v30 }
 0xda4   :  { %v850_v32 = vadd.f32 1e-12, %v848_v31 }
 0xda5   :  { %v847_v33 = vpop.xlane.xlu0 %846 }
 0xda6   :  { %1390 = vrsqrt.f32 %v850_v32  ;;  %v849_v34 = vmul.f32 0.03125, %v847_v33 }
 0xda8   :  { %v851_v35 = vadd.f32 1e-12, %v849_v34 }
 0xdaa   :  { %1392 = vrsqrt.f32 %v851_v35 }
 0xdb0   :  { %v1391_v36 = vpop.eup %1390 }
 0xdb1   :  { %v854_v38 = vmul.f32 %v1391_v36, %v838_v21 }
 0xdb3   :  { %v862_v42 = vmul.f32 %v1148_v39, %v854_v38 }
 0xdb4   :  { %v1393_v40 = vpop.eup %1392 }
 0xdb5   :  { %v855_v41 = vmul.f32 %v1393_v40, %v839_v23  ;;  %v870_v45 = vadd.f32 %v1149_v43, %v862_v42 }
 0xdb7   :  { %v863_v44 = vmul.f32 %v1148_v39, %v855_v41 }
 0xdb9   :  { %v871_v46 = vadd.f32 %v1149_v43, %v863_v44 }
 0xdbb   :  { %v874_v47 = vpack.c.bf16 %v871_v46, %v870_v45 }
 0xdbd   :  { %1297 = vmatpush3.bf16.msra.mxu0 %v874_v47 }
 0xdbe   :  { %1302 = vmatprep.subr.bf16.mxu0 %v1419_v2 }
 0xdc0   :  { %1299 = vmatmul.mubr.msk.bf16.vlgmr.msra.gmra.mrb[12].mxu0 %vm225_vm10, %v873_v48 }
 0xdc1   :  { %1303 = vmatpush3.bf16.msra.mxu0 %v1357_v49  ;;  %1306 = vmatprep.mubr.msk.bf16.mxu0 %vm1420_vm1, %v1419_v2 }
 0xdc2   :  { %1304 = vmatprep.subr.bf16.mxu0 %v1419_v2 }
 0xdc5   :  { %1305 = vmatpush3.bf16.msra.mxu0 %v1358_v50 }
 0xdc6   :  { %1310 = vmatprep.subr.bf16.mxu0 %v1419_v2 }
 0xe93   :  { %v912_v51 = vpop.f32.mrb[12].mxu0 }
 0xe94   :  { %v922_v53 = vpack.c.bf16 %v912_v51, %v912_v51  ;;  %v1300_v54 = vpop.f32.mrb[13].mxu0 }
 0xe95   :  { %v915_v55 = vpop.f32.mrb[14].mxu0 }
 0xe96   :  { %v1301_v56 = vpop.f32.mrb[15].mxu0  ;;  %1307 = vmatmul.mubr.msk.bf16.vlgmr.msra.gmra.mrb[16].mxu0 %vm175_vm9, %v922_v53 }
 0xe97   :  { %1311 = vmatpush3.bf16.msra.mxu0 %v1359_v52  ;;  %1324 = vmatprep.mubr.msk.bf16.mxu0 %vm1420_vm1, %v1419_v2 }
 0xe98   :  { %1312 = vmatprep.subr.bf16.mxu0 %v1419_v2 }
 0xe9b   :  { %1313 = vmatpush3.bf16.msra.mxu0 %v1360_v57 }
 0xe9c   :  { %1314 = vmatprep.subr.bf16.mxu0 %v1419_v2 }
 0xe9f   :  { %1315 = vmatpush3.bf16.msra.mxu0 %v1361_v58 }
 0xea0   :  { %1316 = vmatprep.subr.bf16.mxu0 %v1419_v2 }
 0xea3   :  { %1317 = vmatpush3.bf16.msra.mxu0 %v1362_v59 }
 0xea4   :  { %1318 = vmatprep.subr.bf16.mxu0 %v1419_v2 }
 0xea7   :  { %1319 = vmatpush3.bf16.msra.mxu0 %v1363_v60 }
 0xea8   :  { %1320 = vmatprep.subr.bf16.mxu0 %v1419_v2 }
 0xeab   :  { %1321 = vmatpush3.bf16.msra.mxu0 %v1364_v61 }
 0xeac   :  { %1322 = vmatprep.subr.bf16.mxu0 %v1419_v2  ;;  %v1163_v2 = vld [vmem:[%s1731_s4 + $0x9] ss:$0 sm:$0xff] }
 0xeaf   :  { %1323 = vmatpush3.bf16.msra.mxu0 %v1045_v63 }
 0xf69   :  { %v979_v1 = vpop.f32.mrb[16].mxu0 }
 0xf6a   :  { %v980_v3 = vadd.f32 %v1151_v0, %v979_v1  ;;  %v1308_v4 = vpop.f32.mrb[17].mxu0 }
 0xf6b   :  { %v982_v5 = vpop.f32.mrb[18].mxu0 }
 0xf6c   :  { %v985_v6 = vmax.f32 %v980_v3, 0.0  ;;  %v1309_v7 = vpop.f32.mrb[19].mxu0 }
 0xf6e   :  { %v999_v8 = vpack.c.bf16 %v985_v6, %v985_v6 }
 0xf70   :  { %1325 = vmatmul.mubr.msk.bf16.vlgmr.msra.gmra.mrb[20].mxu0 %vm1039_vm12, %v999_v8 }
0x1043   :  { %v1081_v9 = vpop.f32.mrb[20].mxu0 }
0x1044   :  { %v1094_v10 = vadd.f32 %v1163_v2, %v1081_v9  ;;  %v1326_v11 = vpop.f32.mrb[21].mxu0 }
0x1045   :  { %v1084_v12 = vpop.f32.mrb[22].mxu0 }
0x1046   :  { %v1327_v13 = vpop.f32.mrb[23].mxu0  ;;  %1096 = vst.msk [vmem:[#allocation2] sm:$0x3] %vm1095_vm13, %v1094_v10 }
0x1047   :  { %1405 = shalt.err (!%p1402_p4)
}
0x1048   :  { %s1406_s4 = scalar_lea.hbm %s1733_s6, 32 }
0x1049   :  { %p1407_p5 = scmp.ne.s32.totalorder %s1733_s6, %s1406_s4  ;;  %p1410_p6 = scmp.lt.u32.totalorder %s1406_s4, %s1733_s6 }
0x104b   :  { %p1412_p7 = pnand %p1410_p6, %p1407_p5 }
0x104d   :  { %1415 = shalt.err (!%p1412_p7)
}
0x104e   :  { %1106 = dma.vmem_to_hbm [thread:$0]  %s1104_s9, 32, %s1733_s6, [#allocation3]  }
0x104f   :  { %1416 = dma.done.wait [#allocation3], 32  }
0x1050   :  { %1417 = vsyncadd [#allocation3], 4294967264 }
0x1051   :  { %1110 = vsyncpa [#allocation3], 1 }

</bundles_post_ra>
